<compile_context>
chip_gen: v6e
topology: v6e:2x2x1
jax: 0.10.0
libtpu: 0.0.40
codegen_flags: <defaults>
</compile_context>

<pallas_src>
import functools

import jax
import jax.numpy as jnp
from jax.experimental import pallas as pl
from jax.experimental.pallas import tpu as pltpu

N_EMBED = 192
BLOCK_SIZE = 64


def _head_kernel(x_ref, w_ref, bias_ref, o_ref, *, head: int):
    # x_ref: (B*T, C) f32   w_ref: (C, 3H) bf16 fused [q*scale | k | v]
    # bias_ref: (B*T, B*T) f32 additive causal/block-diag bias   o_ref: (B*T, H)
    x = x_ref[...].astype(jnp.bfloat16)
    w = w_ref[...]                                    # already bf16, scale folded

    # Fused QKV projection: one MXU pass, f32 accumulation.
    qkv = jnp.dot(x, w, preferred_element_type=jnp.float32)          # (B*T, 3H)
    q = qkv[:, :head].astype(jnp.bfloat16)            # 1/sqrt(H) already in weight
    k = qkv[:, head:2 * head].astype(jnp.bfloat16)
    v = qkv[:, 2 * head:].astype(jnp.bfloat16)

    # Full (B*T, B*T) score block; contract on the head dim (no explicit k.T).
    scores = jax.lax.dot_general(
        q, k,
        dimension_numbers=(((1,), (1,)), ((), ())),
        preferred_element_type=jnp.float32)                           # (B*T, B*T)

    # Precomputed additive bias: 0 where attended, -1e30 where masked.
    scores = scores + bias_ref[...]

    # Numerically stable softmax in f32, normalization deferred past the PV
    # matmul so the reciprocal multiply touches (B*T, H) instead of (B*T, B*T).
    m = jnp.max(scores, axis=-1, keepdims=True)
    p = jnp.exp(scores - m)
    denom = jnp.sum(p, axis=-1, keepdims=True)

    # TODO(synk): training-mode attention-weight dropout would be applied to p here.

    out = jnp.dot(p.astype(jnp.bfloat16), v,
                  preferred_element_type=jnp.float32)                 # (B*T, H)
    out = out * pl.reciprocal(denom)                  # exact; (B*T, 1) broadcast
    o_ref[...] = out.astype(o_ref.dtype)


def prepare_head_params(wk, wq, wv):
    """One-time init: fuse [q|k|v] weights, fold 1/sqrt(H) into q, cast to bf16."""
    H = wk.shape[1]
    scale = 1.0 / jnp.sqrt(jnp.float32(H))
    w_qkv = jnp.concatenate([wq * scale, wk, wv], axis=1)             # (C, 3H)
    return w_qkv.astype(jnp.bfloat16)


def make_causal_bias(B, T, dtype=jnp.float32):
    """One-time init: block-diagonal causal additive bias for the flattened batch."""
    n = B * T
    row = jnp.arange(n)[:, None]
    col = jnp.arange(n)[None, :]
    mask = jnp.logical_and(row // T == col // T, col <= row)
    return jnp.where(mask, jnp.float32(0.0), jnp.float32(-1e30)).astype(dtype)


def head_forward(x, w_qkv_bf16, causal_bias):
    """x: (B, T, C) f32; w_qkv_bf16: (C, 3H) bf16 (from prepare_head_params);
    causal_bias: (B*T, B*T) f32 (from make_causal_bias)."""
    B, T, C = x.shape
    H = w_qkv_bf16.shape[1] // 3
    x_flat = x.reshape(B * T, C)

    out_flat = pl.pallas_call(
        functools.partial(_head_kernel, head=H),
        out_shape=jax.ShapeDtypeStruct((B * T, H), x.dtype),
        grid=(1,),
        in_specs=[
            pl.BlockSpec((B * T, C), lambda i: (0, 0)),       # all tokens at once
            pl.BlockSpec((C, 3 * H), lambda i: (0, 0)),       # fused bf16 QKV weight
            pl.BlockSpec((B * T, B * T), lambda i: (0, 0)),   # additive causal bias
        ],
        out_specs=pl.BlockSpec((B * T, H), lambda i: (0, 0)),
        compiler_params=pltpu.CompilerParams(
            dimension_semantics=("arbitrary",),
        ),
    )(x_flat, w_qkv_bf16, causal_bias)
    return out_flat.reshape(B, T, H)


def reference_head(x, wk, wq, wv):
    """Pure-JAX f32 reference matching the PyTorch forward (eval mode)."""
    k = x @ wk
    q = x @ wq
    v = x @ wv
    H = k.shape[-1]
    wei = (q @ jnp.swapaxes(k, -2, -1)) * (H ** -0.5)
    T = x.shape[1]
    tril = jnp.tril(jnp.ones((T, T), dtype=bool))
    wei = jnp.where(tril, wei, -jnp.inf)
    wei = jax.nn.softmax(wei, axis=-1)
    return wei @ v


if __name__ == "__main__":
    B = 2
    T = BLOCK_SIZE       # 64 (<= block_size, tril covers full T)
    C = N_EMBED          # 192
    H = 32               # head_size

    key = jax.random.PRNGKey(0)
    kx, kk, kq, kv = jax.random.split(key, 4)

    x = jax.random.normal(kx, (B, T, C), dtype=jnp.float32)
    # nn.Linear(n_embed, head_size, bias=False) weight is (H, C); store (C, H).
    bound = 1.0 / jnp.sqrt(jnp.float32(C))
    wk = jax.random.uniform(kk, (C, H), jnp.float32, -bound, bound)
    wq = jax.random.uniform(kq, (C, H), jnp.float32, -bound, bound)
    wv = jax.random.uniform(kv, (C, H), jnp.float32, -bound, bound)

    # One-time (init) preprocessing: fused/scaled bf16 weight + additive mask bias.
    w_qkv_bf16 = prepare_head_params(wk, wq, wv)
    causal_bias = make_causal_bias(B, T)

    out = head_forward(x, w_qkv_bf16, causal_bias)
    out = jax.block_until_ready(out)

    ref = reference_head(x, wk, wq, wv)
    assert out.shape == (B, T, H)
    # bf16 MXU operands (incl. scale folded into the bf16 weight) vs f32 reference.
    assert jnp.allclose(out, ref, atol=5e-2, rtol=5e-2), "mismatch vs reference"

    print("KERNEL_OK")
</pallas_src>

<mosaic_0001>
module attributes {stable_mosaic.version = 11 : i64} {
  func.func @_head_kernel(%arg0: i32, %arg1: memref<128x192xf32, #tpu.memory_space<vmem>>, %arg2: memref<192x96xbf16, #tpu.memory_space<vmem>>, %arg3: memref<128x128xf32, #tpu.memory_space<vmem>>, %arg4: memref<128x32xf32, #tpu.memory_space<vmem>>) attributes {dimension_semantics = [#tpu.dimension_semantics<arbitrary>], iteration_bounds = array<i64: 1>, scalar_prefetch = 0 : i64, scratch_operands = 0 : i64, tpu.core_type = #tpu.core_type<tc>, window_params = [{pipeline_mode = #tpu.pipeline_mode<synchronous>, transform_indices = @transform_0, window_bounds = array<i64: 128, 192>}, {pipeline_mode = #tpu.pipeline_mode<synchronous>, transform_indices = @transform_1, window_bounds = array<i64: 192, 96>}, {pipeline_mode = #tpu.pipeline_mode<synchronous>, transform_indices = @transform_2, window_bounds = array<i64: 128, 128>}, {pipeline_mode = #tpu.pipeline_mode<synchronous>, transform_indices = @transform_3, window_bounds = array<i64: 128, 32>}]} {
    %c0 = arith.constant 0 : index
    %c0_0 = arith.constant 0 : index
    %0 = vector.load %arg1[%c0, %c0_0] : memref<128x192xf32, #tpu.memory_space<vmem>>, vector<128x192xf32>
    %1 = arith.truncf %0 : vector<128x192xf32> to vector<128x192xbf16>
    %c0_1 = arith.constant 0 : index
    %c0_2 = arith.constant 0 : index
    %2 = vector.load %arg2[%c0_1, %c0_2] : memref<192x96xbf16, #tpu.memory_space<vmem>>, vector<192x96xbf16>
    %cst = arith.constant dense<0.000000e+00> : vector<128x96xf32>
    %3 = tpu.matmul %1, %2, %cst {dimension_numbers = #tpu.dot_dimension_numbers<[1], [0], [0], [1], [0, 0, 1, 1], [], []>} : vector<128x192xbf16>, vector<192x96xbf16>, vector<128x96xf32> -> vector<128x96xf32>
    %4 = vector.extract_strided_slice %3 {offsets = [0, 0], sizes = [128, 32], strides = [1, 1]} : vector<128x96xf32> to vector<128x32xf32>
    %5 = arith.truncf %4 : vector<128x32xf32> to vector<128x32xbf16>
    %6 = vector.extract_strided_slice %3 {offsets = [0, 32], sizes = [128, 32], strides = [1, 1]} : vector<128x96xf32> to vector<128x32xf32>
    %7 = arith.truncf %6 : vector<128x32xf32> to vector<128x32xbf16>
    %8 = vector.extract_strided_slice %3 {offsets = [0, 64], sizes = [128, 32], strides = [1, 1]} : vector<128x96xf32> to vector<128x32xf32>
    %9 = arith.truncf %8 : vector<128x32xf32> to vector<128x32xbf16>
    %cst_3 = arith.constant dense<0.000000e+00> : vector<128x128xf32>
    %10 = tpu.matmul %5, %7, %cst_3 {dimension_numbers = #tpu.dot_dimension_numbers<[1], [1], [0], [0], [0, 0, 1, 0], [], []>} : vector<128x32xbf16>, vector<128x32xbf16>, vector<128x128xf32> -> vector<128x128xf32>
    %c0_4 = arith.constant 0 : index
    %c0_5 = arith.constant 0 : index
    %11 = vector.load %arg3[%c0_4, %c0_5] : memref<128x128xf32, #tpu.memory_space<vmem>>, vector<128x128xf32>
    %12 = arith.addf %10, %11 : vector<128x128xf32>
    %cst_6 = arith.constant dense<0xFF800000> : vector<128xf32>
    %13 = vector.multi_reduction <maximumf>, %12, %cst_6 [1] : vector<128x128xf32> to vector<128xf32>
    %14 = vector.shape_cast %13 : vector<128xf32> to vector<128x1xf32>
    %15 = vector.broadcast %14 : vector<128x1xf32> to vector<128x128xf32>
    %16 = arith.subf %12, %15 : vector<128x128xf32>
    %17 = math.exp %16 : vector<128x128xf32>
    %cst_7 = arith.constant dense<0.000000e+00> : vector<128xf32>
    %18 = vector.multi_reduction <add>, %17, %cst_7 [1] : vector<128x128xf32> to vector<128xf32>
    %19 = vector.shape_cast %18 : vector<128xf32> to vector<128x1xf32>
    %20 = arith.truncf %17 : vector<128x128xf32> to vector<128x128xbf16>
    %cst_8 = arith.constant dense<0.000000e+00> : vector<128x32xf32>
    %21 = tpu.matmul %20, %9, %cst_8 {dimension_numbers = #tpu.dot_dimension_numbers<[1], [0], [0], [1], [0, 0, 1, 1], [], []>} : vector<128x128xbf16>, vector<128x32xbf16>, vector<128x32xf32> -> vector<128x32xf32>
    %22 = tpu.reciprocal %19 : vector<128x1xf32> -> vector<128x1xf32>
    %23 = vector.broadcast %22 : vector<128x1xf32> to vector<128x32xf32>
    %24 = arith.mulf %21, %23 : vector<128x32xf32>
    %c0_9 = arith.constant 0 : index
    %c0_10 = arith.constant 0 : index
    %25 = vector.load %arg4[%c0_9, %c0_10] : memref<128x32xf32, #tpu.memory_space<vmem>>, vector<128x32xf32>
    tpu.vector_store %arg4[%c0_9, %c0_10], %24 {strides = array<i32>} : memref<128x32xf32, #tpu.memory_space<vmem>>, vector<128x32xf32>,
    return
  }
  func.func @transform_0(%arg0: i32) -> (i32, i32) {
    %c0_i32 = arith.constant 0 : i32
    %c0_i32_0 = arith.constant 0 : i32
    %c0_i32_1 = arith.constant 0 : i32
    return %c0_i32, %c0_i32_0 : i32, i32
  }
  func.func @transform_1(%arg0: i32) -> (i32, i32) {
    %c0_i32 = arith.constant 0 : i32
    %c0_i32_0 = arith.constant 0 : i32
    %c0_i32_1 = arith.constant 0 : i32
    return %c0_i32, %c0_i32_0 : i32, i32
  }
  func.func @transform_2(%arg0: i32) -> (i32, i32) {
    %c0_i32 = arith.constant 0 : i32
    %c0_i32_0 = arith.constant 0 : i32
    %c0_i32_1 = arith.constant 0 : i32
    return %c0_i32, %c0_i32_0 : i32, i32
  }
  func.func @transform_3(%arg0: i32) -> (i32, i32) {
    %c0_i32 = arith.constant 0 : i32
    %c0_i32_0 = arith.constant 0 : i32
    %c0_i32_1 = arith.constant 0 : i32
    return %c0_i32, %c0_i32_0 : i32, i32
  }
}

</mosaic_0001>

<bundles_post_ra>
// kernel: tpu_custom_call.1
= control target key start
LH: loop header
LB: loop body
LE: loop exit
PB: predicated region body
PF: predicated region fallthrough
CT: control target
= control target key end

     0   :  { %v995_v0 = vmov 0   ;;  %vm159_vm0 = vcmask 523264   ;;  %vm329_vm1 = vcmask 261120   ;;  %s997_s17 = smov 64   ;;  %s1414_s1 = inlined_call_operand.vmem [shape: bf16[192,96], index: 1, kind: input, shape index: {}]   ;;  %s1415_s0 = inlined_call_operand.vmem [shape: f32[128,192], index: 0, kind: input, shape index: {}]   ;;  %s1416_s2 = inlined_call_operand.vmem [shape: f32[128,128], index: 2, kind: input, shape index: {}]   ;;  %s1417_s3 = inlined_call_operand.vmem [shape: f32[128,32], index: 3, kind: output, shape index: {}]  }
   0x1   :  { %184 = vmatprep.subr.bf16.mxu0 %v995_v0  ;;  %v919_v1 = vld [vmem:[%s1414_s1 + $0x38] sm:$0xff]   ;;  %v920_v2 = vld [vmem:[%s1414_s1 + $0x30] sm:$0xff]   ;;  %v921_v3 = vld [vmem:[%s1414_s1 + $0x28] sm:$0xff]  }
   0x2   :  { %185 = vmatpush1.bf16.msra.mxu0 %v919_v1  ;;  %v922_v4 = vld [vmem:[%s1414_s1 + $0x20] sm:$0xff]   ;;  %v16_v5 = vld [vmem:[%s1415_s0 + $0x8] sm:$0xff]  ;;  %v18_v6 = vld [vmem:[%s1415_s0 + $0x18] sm:$0xff] }
   0x3   :  { %186 = vmatprep.subr.bf16.mxu0 %v995_v0  ;;  %v48_v7 = vpack.c.bf16 %v18_v6, %v16_v5  ;;  %v923_v8 = vld [vmem:[%s1414_s1 + $0x18] sm:$0xff]   ;;  %v924_v9 = vld [vmem:[%s1414_s1 + $0x10] sm:$0xff]   ;;  %v925_v10 = vld [vmem:[%s1414_s1 + $0x8] sm:$0xff]  }
   0x4   :  { %v926_v11 = vld [vmem:[%s1414_s1] sm:$0xff]   ;;  %v927_v12 = vld [vmem:[%s1414_s1 + $0x58] sm:$0xff]   ;;  %v928_v13 = vld [vmem:[%s1414_s1 + $0x50] sm:$0xff]  }
   0x5   :  { %780 = vmatprep.mubr.msk.bf16.mxu0 %vm159_vm0, %v48_v7  ;;  %v929_v14 = vld [vmem:[%s1414_s1 + $0x48] sm:$0xff]   ;;  %v930_v15 = vld [vmem:[%s1414_s1 + $0x40] sm:$0xff]   ;;  %v17_v17 = vld [vmem:[%s1415_s0 + $0x10] sm:$0xff] }
   0x6   :  { %187 = vmatpush1.bf16.msra.mxu0 %v920_v2  ;;  %v15_v16 = vld [vmem:[%s1415_s0] sm:$0xff]  ;;  %v20_v18 = vld [vmem:[%s1415_s0 + $0x28] sm:$0xff]  ;;  %v22_v19 = vld [vmem:[%s1415_s0 + $0x38] sm:$0xff] }
   0x7   :  { %188 = vmatprep.subr.bf16.mxu0 %v995_v0  ;;  %v47_v20 = vpack.c.bf16 %v17_v17, %v15_v16  ;;  %v50_v21 = vpack.c.bf16 %v22_v19, %v20_v18  ;;  %v19_v22 = vld [vmem:[%s1415_s0 + $0x20] sm:$0xff]  ;;  %v21_v23 = vld [vmem:[%s1415_s0 + $0x30] sm:$0xff]  ;;  %v24_v24 = vld [vmem:[%s1415_s0 + $0x48] sm:$0xff] }
   0x8   :  { %v26_v25 = vld [vmem:[%s1415_s0 + $0x58] sm:$0xff]  ;;  %v49_v26 = vpack.c.bf16 %v21_v23, %v19_v22  ;;  %v23_v28 = vld [vmem:[%s1415_s0 + $0x40] sm:$0xff]  ;;  %v25_v29 = vld [vmem:[%s1415_s0 + $0x50] sm:$0xff] }
   0x9   :  { %v52_v27 = vpack.c.bf16 %v26_v25, %v24_v24  ;;  %v28_v30 = vld [vmem:[%s1415_s0 + $0x68] sm:$0xff]  ;;  %v30_v31 = vld [vmem:[%s1415_s0 + $0x78] sm:$0xff]  ;;  %v51_v32 = vpack.c.bf16 %v25_v29, %v23_v28  ;;  %v27_v34 = vld [vmem:[%s1415_s0 + $0x60] sm:$0xff] }
   0xa   :  { %189 = vmatpush1.bf16.msra.mxu0 %v921_v3  ;;  %v54_v33 = vpack.c.bf16 %v30_v31, %v28_v30  ;;  %v29_v35 = vld [vmem:[%s1415_s0 + $0x70] sm:$0xff]  ;;  %v32_v36 = vld [vmem:[%s1415_s0 + $0x88] sm:$0xff]  ;;  %v34_v37 = vld [vmem:[%s1415_s0 + $0x98] sm:$0xff] }
   0xb   :  { %190 = vmatprep.subr.bf16.mxu0 %v995_v0  ;;  %v53_v38 = vpack.c.bf16 %v29_v35, %v27_v34  ;;  %v56_v39 = vpack.c.bf16 %v34_v37, %v32_v36  ;;  %v31_v40 = vld [vmem:[%s1415_s0 + $0x80] sm:$0xff]  ;;  %v33_v41 = vld [vmem:[%s1415_s0 + $0x90] sm:$0xff]  ;;  %v36_v42 = vld [vmem:[%s1415_s0 + $0xa8] sm:$0xff] }
   0xc   :  { %v38_v43 = vld [vmem:[%s1415_s0 + $0xb8] sm:$0xff]  ;;  %v55_v44 = vpack.c.bf16 %v33_v41, %v31_v40  ;;  %v35_v46 = vld [vmem:[%s1415_s0 + $0xa0] sm:$0xff]  ;;  %v37_v47 = vld [vmem:[%s1415_s0 + $0xb0] sm:$0xff] }
   0xd   :  { %v58_v45 = vpack.c.bf16 %v38_v43, %v36_v42  ;;  %v40_v48 = vld [vmem:[%s1415_s0 + $0xc8] sm:$0xff]  ;;  %v42_v49 = vld [vmem:[%s1415_s0 + $0xd8] sm:$0xff]  ;;  %v57_v50 = vpack.c.bf16 %v37_v47, %v35_v46  ;;  %v39_v52 = vld [vmem:[%s1415_s0 + $0xc0] sm:$0xff] }
   0xe   :  { %191 = vmatpush1.bf16.msra.mxu0 %v922_v4  ;;  %v60_v51 = vpack.c.bf16 %v42_v49, %v40_v48  ;;  %v41_v53 = vld [vmem:[%s1415_s0 + $0xd0] sm:$0xff]  ;;  %v44_v54 = vld [vmem:[%s1415_s0 + $0xe8] sm:$0xff]  ;;  %v46_v55 = vld [vmem:[%s1415_s0 + $0xf8] sm:$0xff] }
   0xf   :  { %192 = vmatprep.subr.bf16.mxu0 %v995_v0  ;;  %v59_v56 = vpack.c.bf16 %v41_v53, %v39_v52  ;;  %v62_v57 = vpack.c.bf16 %v46_v55, %v44_v54  ;;  %v43_v58 = vld [vmem:[%s1415_s0 + $0xe0] sm:$0xff]  ;;  %v45_v59 = vld [vmem:[%s1415_s0 + $0xf0] sm:$0xff]  ;;  %s996_s0 = smov 96  }
  0x10   :  { %v61_v60 = vpack.c.bf16 %v45_v59, %v43_v58  ;;  %v291_v58 = vld [vmem:[%s1416_s2 + $0x10] sm:$0xff] }
  0x12   :  { %193 = vmatpush1.bf16.msra.mxu0 %v923_v8 }
  0x13   :  { %194 = vmatprep.subr.bf16.mxu0 %v995_v0 }
  0x16   :  { %195 = vmatpush1.bf16.msra.mxu0 %v924_v9 }
  0x17   :  { %196 = vmatprep.subr.bf16.mxu0 %v995_v0 }
  0x1a   :  { %197 = vmatpush1.bf16.msra.mxu0 %v925_v10 }
  0x1b   :  { %198 = vmatprep.subr.bf16.mxu0 %v995_v0 }
  0x1e   :  { %199 = vmatpush1.bf16.msra.mxu0 %v926_v11 }
  0x1f   :  { %208 = vmatprep.subr.bf16.mxu0 %v995_v0 }
  0x22   :  { %209 = vmatpush2.bf16.msra.mxu0 %v927_v12 }
  0x23   :  { %210 = vmatprep.subr.bf16.mxu0 %v995_v0 }
  0x26   :  { %211 = vmatpush2.bf16.msra.mxu0 %v928_v13 }
  0x27   :  { %212 = vmatprep.subr.bf16.mxu0 %v995_v0 }
  0x2a   :  { %213 = vmatpush2.bf16.msra.mxu0 %v929_v14 }
  0x2b   :  { %214 = vmatprep.subr.bf16.mxu0 %v995_v0 }
  0x2e   :  { %215 = vmatpush2.bf16.msra.mxu0 %v930_v15 }
  0x31   :  { %217 = vmatmul.mubr.bf16.vlgmr.msra.gmra.mxu0 %v47_v20 }
  0x32   :  { %781 = vmatprep.mubr.msk.bf16.mxu0 %vm159_vm0, %v50_v21 }
  0x39   :  { %225 = vmatmul.mubr.bf16.gmra.mxu0 %v49_v26 }
  0x3a   :  { %782 = vmatprep.mubr.msk.bf16.mxu0 %vm159_vm0, %v52_v27 }
  0x41   :  { %233 = vmatmul.mubr.bf16.gmra.mxu0 %v51_v32 }
  0x42   :  { %783 = vmatprep.mubr.msk.bf16.mxu0 %vm159_vm0, %v54_v33 }
  0x49   :  { %241 = vmatmul.mubr.bf16.gmra.mxu0 %v53_v38 }
  0x4a   :  { %784 = vmatprep.mubr.msk.bf16.mxu0 %vm159_vm0, %v56_v39 }
  0x51   :  { %249 = vmatmul.mubr.bf16.gmra.mxu0 %v55_v44 }
  0x52   :  { %785 = vmatprep.mubr.msk.bf16.mxu0 %vm159_vm0, %v58_v45 }
  0x59   :  { %257 = vmatmul.mubr.bf16.gmra.mxu0 %v57_v50 }
  0x5a   :  { %786 = vmatprep.mubr.msk.bf16.mxu0 %vm159_vm0, %v60_v51 }
  0x61   :  { %265 = vmatmul.mubr.bf16.gmra.mxu0 %v59_v56 }
  0x62   :  { %787 = vmatprep.mubr.msk.bf16.mxu0 %vm159_vm0, %v62_v57 }
  0x69   :  { %273 = vmatmul.mubr.bf16.gmra.mxu0 %v61_v60 }
  0xf1   :  { %v218_v61 = vpop.f32.mrf.mxu0 }
  0xf3   :  { %v220_v62 = vpop.f32.mrf.mxu0 }
  0xf4   :  { %v289_v62 = vld [vmem:[%s1416_s2] sm:$0xff] }
  0xf5   :  { %v221_v63 = vpop.f32.mrf.mxu0 }
  0xf6   :  { %v1158_v0 = vpack.c.bf16 %v221_v63, %v218_v61  ;;  %v292_v63 = vld [vmem:[%s1416_s2 + $0x18] sm:$0xff] }
  0xf7   :  { %v223_v1 = vpop.f32.mrf.mxu0 }
  0xf8   :  { %844 = vmatprep.mubr.msk.bf16.mxu1 %vm329_vm1, %v1158_v0 }
  0xf9   :  { %v226_v2 = vpop.f32.mrf.mxu0 }
  0xfb   :  { %v228_v3 = vpop.f32.mrf.mxu0 }
  0xfd   :  { %v229_v4 = vpop.f32.mrf.mxu0 }
  0xfe   :  { %v1187_v36 = vpack.c.bf16 %v229_v4, %v226_v2 }
  0xff   :  { %v231_v5 = vpop.f32.mrf.mxu0 }
 0x100   :  { %v290_v5 = vld [vmem:[%s1416_s2 + $0x8] sm:$0xff] }
 0x101   :  { %v234_v6 = vpop.f32.mrf.mxu0 }
 0x103   :  { %v236_v7 = vpop.f32.mrf.mxu0 }
 0x105   :  { %v237_v8 = vpop.f32.mrf.mxu0 }
 0x106   :  { %v1168_v27 = vpack.c.bf16 %v237_v8, %v234_v6  ;;  %v295_v8 = vld [vmem:[%s1416_s2 + $0x30] sm:$0xff] }
 0x107   :  { %v239_v9 = vpop.f32.mrf.mxu0 }
 0x109   :  { %v242_v10 = vpop.f32.mrf.mxu0 }
 0x10b   :  { %v244_v11 = vpop.f32.mrf.mxu0 }
 0x10c   :  { %v294_v11 = vld [vmem:[%s1416_s2 + $0x28] sm:$0xff] }
 0x10d   :  { %v245_v12 = vpop.f32.mrf.mxu0 }
 0x10e   :  { %v1177_v34 = vpack.c.bf16 %v245_v12, %v242_v10 }
 0x10f   :  { %v247_v13 = vpop.f32.mrf.mxu0 }
 0x110   :  { %v293_v13 = vld [vmem:[%s1416_s2 + $0x20] sm:$0xff] }
 0x111   :  { %v250_v14 = vpop.f32.mrf.mxu0 }
 0x113   :  { %v252_v15 = vpop.f32.mrf.mxu0 }
 0x115   :  { %v253_v16 = vpop.f32.mrf.mxu0 }
 0x116   :  { %v1165_v24 = vpack.c.bf16 %v253_v16, %v250_v14  ;;  %v299_v16 = vld [vmem:[%s1416_s2 + $0x50] sm:$0xff] }
 0x117   :  { %v255_v17 = vpop.f32.mrf.mxu0 }
 0x119   :  { %v258_v18 = vpop.f32.mrf.mxu0 }
 0x11b   :  { %v260_v19 = vpop.f32.mrf.mxu0 }
 0x11c   :  { %v296_v19 = vld [vmem:[%s1416_s2 + $0x38] sm:$0xff] }
 0x11d   :  { %v261_v20 = vpop.f32.mrf.mxu0 }
 0x11e   :  { %v1162_v21 = vpack.c.bf16 %v261_v20, %v258_v18 }
 0x11f   :  { %v263_v22 = vpop.f32.mrf.mxu0 }
 0x120   :  { %323 = vrot.lane.b32.xlu1 %v1162_v21, %s996_s0  ;;  %v297_v22 = vld [vmem:[%s1416_s2 + $0x40] sm:$0xff] }
 0x121   :  { %v266_v23 = vpop.f32.mrf.mxu0 }
 0x123   :  { %v268_v25 = vpop.f32.mrf.mxu0 }
 0x124   :  { %321 = vrot.lane.b32.xlu1 %v1165_v24, %s996_s0  ;;  %v300_v25 = vld [vmem:[%s1416_s2 + $0x58] sm:$0xff] }
 0x125   :  { %v269_v26 = vpop.f32.mrf.mxu0 }
 0x126   :  { %v1179_v35 = vpack.c.bf16 %v269_v26, %v266_v23 }
 0x127   :  { %v271_v28 = vpop.f32.mrf.mxu0 }
 0x128   :  { %317 = vrot.lane.b32.xlu1 %v1168_v27, %s996_s0 }
 0x129   :  { %v274_v29 = vpop.f32.mrf.mxu0 }
 0x12b   :  { %v276_v30 = vpop.f32.mrf.mxu0 }
 0x12c   :  { %313 = vrot.lane.b32.xlu1 %v1158_v0, %s996_s0 }
 0x12d   :  { %v277_v31 = vpop.f32.mrf.mxu0 }
 0x12e   :  { %v1172_v32 = vpack.c.bf16 %v277_v31, %v274_v29  ;;  %v303_v29 = vld [vmem:[%s1416_s2 + $0x70] sm:$0xff] }
 0x12f   :  { %v279_v33 = vpop.f32.mrf.mxu0 }
 0x130   :  { %605 = vrot.lane.b32.xlu1 %v1162_v21, %s997_s17  ;;  %327 = vrot.lane.b32.xlu0 %v1172_v32, %s996_s0 }
 0x134   :  { %601 = vrot.lane.b32.xlu1 %v1177_v34, %s997_s17  ;;  %325 = vrot.lane.b32.xlu0 %v1179_v35, %s996_s0 }
 0x138   :  { %609 = vrot.lane.b32.xlu1 %v1172_v32, %s997_s17  ;;  %319 = vrot.lane.b32.xlu0 %v1177_v34, %s996_s0 }
 0x13c   :  { %315 = vrot.lane.b32.xlu0 %v1187_v36, %s996_s0 }
 0x140   :  { %607 = vrot.lane.b32.xlu0 %v1179_v35, %s997_s17 }
 0x144   :  { %603 = vrot.lane.b32.xlu0 %v1165_v24, %s997_s17 }
 0x192   :  { %v324_v37 = vpop.permute.xlu1 %323 }
 0x193   :  { %v370_v51 = vsel %vm329_vm1, %v324_v37, 0 }
 0x196   :  { %v322_v38 = vpop.permute.xlu1 %321 }
 0x197   :  { %v367_v53 = vsel %vm329_vm1, %v322_v38, 0 }
 0x19a   :  { %v318_v39 = vpop.permute.xlu1 %317 }
 0x19b   :  { %v361_v55 = vsel %vm329_vm1, %v318_v39, 0 }
 0x19e   :  { %v314_v40 = vpop.permute.xlu1 %313 }
 0x19f   :  { %v355_v57 = vsel %vm329_vm1, %v314_v40, 0 }
 0x1a2   :  { %v606_v41 = vpop.permute.xlu1 %605  ;;  %v328_v42 = vpop.permute.xlu0 %327 }
 0x1a3   :  { %908 = vmatprep.subr.msk.bf16.mxu1 %vm329_vm1, %v328_v42  ;;  %v376_v43 = vsel %vm329_vm1, %v328_v42, 0 }
 0x1a4   :  { %829 = vmatpush3.bf16.xpose.msra.mxu1 %v376_v43  ;;  %v302_v43 = vld [vmem:[%s1416_s2 + $0x68] sm:$0xff] }
 0x1a6   :  { %v602_v44 = vpop.permute.xlu1 %601  ;;  %v326_v45 = vpop.permute.xlu0 %325 }
 0x1a7   :  { %909 = vmatprep.subr.msk.bf16.mxu1 %vm329_vm1, %v326_v45  ;;  %v373_v48 = vsel %vm329_vm1, %v326_v45, 0 }
 0x1aa   :  { %v610_v46 = vpop.permute.xlu1 %609  ;;  %v320_v47 = vpop.permute.xlu0 %319 }
 0x1ab   :  { %860 = vmatprep.subr.bf16.mxu0 %v610_v46  ;;  %v364_v54 = vsel %vm329_vm1, %v320_v47, 0 }
 0x1ac   :  { %831 = vmatpush3.bf16.xpose.msra.mxu1 %v373_v48  ;;  %861 = vmatpush3.bf16.msra.mxu0 %v610_v46 }
 0x1ad   :  { %910 = vmatprep.subr.msk.bf16.mxu1 %vm329_vm1, %v324_v37 }
 0x1ae   :  { %v316_v49 = vpop.permute.xlu0 %315 }
 0x1af   :  { %v358_v56 = vsel %vm329_vm1, %v316_v49, 0 }
 0x1b2   :  { %v608_v50 = vpop.permute.xlu0 %607 }
 0x1b3   :  { %862 = vmatprep.subr.bf16.mxu0 %v608_v50 }
 0x1b4   :  { %833 = vmatpush3.bf16.xpose.msra.mxu1 %v370_v51  ;;  %863 = vmatpush3.bf16.msra.mxu0 %v608_v50 }
 0x1b5   :  { %911 = vmatprep.subr.msk.bf16.mxu1 %vm329_vm1, %v322_v38  ;;  %864 = vmatprep.subr.bf16.mxu0 %v606_v41  ;;  %v304_v38 = vld [vmem:[%s1416_s2 + $0x78] sm:$0xff] }
 0x1b6   :  { %v604_v52 = vpop.permute.xlu0 %603 }
 0x1b8   :  { %865 = vmatpush3.bf16.msra.mxu0 %v606_v41 }
 0x1b9   :  { %866 = vmatprep.subr.bf16.mxu0 %v604_v52 }
 0x1bc   :  { %835 = vmatpush3.bf16.xpose.msra.mxu1 %v367_v53  ;;  %867 = vmatpush3.bf16.msra.mxu0 %v604_v52 }
 0x1bd   :  { %912 = vmatprep.subr.msk.bf16.mxu1 %vm329_vm1, %v320_v47  ;;  %868 = vmatprep.subr.bf16.mxu0 %v602_v44 }
 0x1c0   :  { %869 = vmatpush3.bf16.msra.mxu0 %v602_v44 }
 0x1c4   :  { %837 = vmatpush3.bf16.xpose.msra.mxu1 %v364_v54 }
 0x1c5   :  { %913 = vmatprep.subr.msk.bf16.mxu1 %vm329_vm1, %v318_v39 }
 0x1cc   :  { %839 = vmatpush3.bf16.xpose.msra.mxu1 %v361_v55 }
 0x1cd   :  { %914 = vmatprep.subr.msk.bf16.mxu1 %vm329_vm1, %v316_v49 }
 0x1d4   :  { %841 = vmatpush3.bf16.xpose.msra.mxu1 %v358_v56 }
 0x1d5   :  { %915 = vmatprep.subr.msk.bf16.mxu1 %vm329_vm1, %v314_v40 }
 0x1dc   :  { %843 = vmatpush3.bf16.xpose.msra.mxu1 %v355_v57 }
 0x1dd   :  { %892 = vmatprep.subr.bf16.mxu1 %v610_v46 }
 0x1e3   :  { %845 = vmatmul.mubr.msk.bf16.vlgmr.msra.gmra.mxu1 %vm329_vm1, %v1187_v36 }
 0x1e4   :  { %848 = vmatprep.mubr.msk.bf16.mxu1 %vm329_vm1, %v1168_v27  ;;  %900 = vmatpush3.bf16.msra.mxu1 %v610_v46 }
 0x1e5   :  { %893 = vmatprep.subr.bf16.mxu1 %v608_v50 }
 0x1e8   :  { %901 = vmatpush3.bf16.msra.mxu1 %v608_v50 }
 0x1e9   :  { %894 = vmatprep.subr.bf16.mxu1 %v606_v41 }
 0x1eb   :  { %849 = vmatmul.mubr.msk.bf16.gmra.mxu1 %vm329_vm1, %v1177_v34 }
 0x1ec   :  { %852 = vmatprep.mubr.msk.bf16.mxu1 %vm329_vm1, %v1165_v24  ;;  %902 = vmatpush3.bf16.msra.mxu1 %v606_v41 }
 0x1ed   :  { %895 = vmatprep.subr.bf16.mxu1 %v604_v52 }
 0x1f0   :  { %903 = vmatpush3.bf16.msra.mxu1 %v604_v52 }
 0x1f1   :  { %896 = vmatprep.subr.bf16.mxu1 %v602_v44 }
 0x1f3   :  { %853 = vmatmul.mubr.msk.bf16.gmra.mxu1 %vm329_vm1, %v1162_v21 }
 0x1f4   :  { %856 = vmatprep.mubr.msk.bf16.mxu1 %vm329_vm1, %v1179_v35  ;;  %904 = vmatpush3.bf16.msra.mxu1 %v602_v44  ;;  %v301_v35 = vld [vmem:[%s1416_s2 + $0x60] sm:$0xff] }
 0x1fb   :  { %857 = vmatmul.mubr.msk.bf16.gmra.mxu1 %vm329_vm1, %v1172_v32  ;;  %v298_v32 = vld [vmem:[%s1416_s2 + $0x48] sm:$0xff] }
 0x2a3   :  { %v846_v59 = vpop.f32.mrf.mxu1 }
 0x2a4   :  { %v1227_v60 = vadd.f32 %v846_v59, %v291_v58 }
 0x2a5   :  { %v412_v61 = vpop.f32.mrf.mxu1 }
 0x2a6   :  { %479 = vmax.xlane.f32.xlu1 %v1227_v60  ;;  %v1236_v2 = vadd.f32 %v412_v61, %v289_v62 }
 0x2a7   :  { %v847_v1 = vpop.f32.mrf.mxu1 }
 0x2a8   :  { %v1238_v3 = vadd.f32 %v847_v1, %v292_v63 }
 0x2a9   :  { %v415_v4 = vpop.f32.mrf.mxu1 }
 0x2aa   :  { %481 = vmax.xlane.f32.xlu0 %v1238_v3  ;;  %475 = vmax.xlane.f32.xlu1 %v1236_v2  ;;  %v1245_v7 = vadd.f32 %v415_v4, %v290_v5 }
 0x2ab   :  { %v850_v6 = vpop.f32.mrf.mxu1 }
 0x2ac   :  { %v1254_v12 = vadd.f32 %v850_v6, %v295_v8 }
 0x2ad   :  { %v428_v9 = vpop.f32.mrf.mxu1 }
 0x2ae   :  { %477 = vmax.xlane.f32.xlu0 %v1245_v7  ;;  %v1265_v18 = vadd.f32 %v428_v9, %v293_v13 }
 0x2af   :  { %v851_v10 = vpop.f32.mrf.mxu1 }
 0x2b0   :  { %v1277_v24 = vadd.f32 %v851_v10, %v296_v19 }
 0x2b1   :  { %v431_v14 = vpop.f32.mrf.mxu1 }
 0x2b2   :  { %v1259_v15 = vadd.f32 %v431_v14, %v294_v11  ;;  %487 = vmax.xlane.f32.xlu0 %v1254_v12 }
 0x2b3   :  { %v854_v17 = vpop.f32.mrf.mxu1 }
 0x2b4   :  { %485 = vmax.xlane.f32.xlu1 %v1259_v15  ;;  %v1271_v21 = vadd.f32 %v854_v17, %v299_v16 }
 0x2b5   :  { %v444_v20 = vpop.f32.mrf.mxu1 }
 0x2b6   :  { %483 = vmax.xlane.f32.xlu0 %v1265_v18  ;;  %v1283_v28 = vadd.f32 %v444_v20, %v297_v22 }
 0x2b7   :  { %v855_v23 = vpop.f32.mrf.mxu1 }
 0x2b8   :  { %495 = vmax.xlane.f32.xlu1 %v1271_v21  ;;  %v1289_v31 = vadd.f32 %v855_v23, %v300_v25 }
 0x2b9   :  { %v447_v26 = vpop.f32.mrf.mxu1 }
 0x2ba   :  { %489 = vmax.xlane.f32.xlu0 %v1277_v24  ;;  %v1301_v37 = vadd.f32 %v447_v26, %v298_v32 }
 0x2bb   :  { %v858_v30 = vpop.f32.mrf.mxu1 }
 0x2bc   :  { %491 = vmax.xlane.f32.xlu1 %v1283_v28  ;;  %v1295_v34 = vadd.f32 %v858_v30, %v303_v29 }
 0x2bd   :  { %v460_v33 = vpop.f32.mrf.mxu1 }
 0x2be   :  { %497 = vmax.xlane.f32.xlu0 %v1289_v31  ;;  %v1307_v40 = vadd.f32 %v460_v33, %v301_v35 }
 0x2bf   :  { %v859_v39 = vpop.f32.mrf.mxu1 }
 0x2c0   :  { %503 = vmax.xlane.f32.xlu1 %v1295_v34  ;;  %v1310_v41 = vadd.f32 %v859_v39, %v304_v38 }
 0x2c1   :  { %v463_v42 = vpop.f32.mrf.mxu1 }
 0x2c2   :  { %493 = vmax.xlane.f32.xlu0 %v1301_v37  ;;  %v1317_v44 = vadd.f32 %v463_v42, %v302_v43 }
 0x2c4   :  { %499 = vmax.xlane.f32.xlu1 %v1307_v40 }
 0x2c6   :  { %505 = vmax.xlane.f32.xlu0 %v1310_v41 }
 0x2ca   :  { %501 = vmax.xlane.f32.xlu0 %v1317_v44 }
 0x2d5   :  { %597 = vrot.lane.b32.xlu1 %v1187_v36, %s997_s17 }
 0x2d9   :  { %595 = vrot.lane.b32.xlu1 %v1158_v0, %s997_s17 }
 0x2e0   :  { %599 = vrot.lane.b32.xlu0 %v1168_v27, %s997_s17 }
 0x32f   :  { %v480_v45 = vpop.xlane.xlu1 %479 }
 0x330   :  { %v509_v46 = vsub.f32 %v1227_v60, %v480_v45 }
 0x332   :  { %v527_v47 = vmul.f32 1.442695, %v509_v46 }
 0x333   :  { %v476_v48 = vpop.xlane.xlu1 %475  ;;  %v482_v49 = vpop.xlane.xlu0 %481 }
 0x334   :  { %931 = vpow2.f32 %v527_v47  ;;  %v507_v50 = vsub.f32 %v1236_v2, %v476_v48  ;;  %v510_v51 = vsub.f32 %v1238_v3, %v482_v49 }
 0x336   :  { %v523_v52 = vmul.f32 1.442695, %v507_v50  ;;  %v529_v53 = vmul.f32 1.442695, %v510_v51 }
 0x337   :  { %v478_v36 = vpop.xlane.xlu0 %477 }
 0x338   :  { %933 = vpow2.f32 %v523_v52  ;;  %v508_v0 = vsub.f32 %v1245_v7, %v478_v36 }
 0x339   :  { %935 = vpow2.f32 %v529_v53 }
 0x33a   :  { %v525_v54 = vmul.f32 1.442695, %v508_v0 }
 0x33b   :  { %v488_v27 = vpop.xlane.xlu0 %487 }
 0x33c   :  { %937 = vpow2.f32 %v525_v54  ;;  %v513_v55 = vsub.f32 %v1254_v12, %v488_v27 }
 0x33d   :  { %v486_v56 = vpop.xlane.xlu1 %485 }
 0x33e   :  { %v535_v57 = vmul.f32 1.442695, %v513_v55  ;;  %v512_v58 = vsub.f32 %v1259_v15, %v486_v56 }
 0x33f   :  { %v484_v59 = vpop.xlane.xlu0 %483 }
 0x340   :  { %939 = vpow2.f32 %v535_v57  ;;  %v533_v60 = vmul.f32 1.442695, %v512_v58  ;;  %v511_v61 = vsub.f32 %v1265_v18, %v484_v59 }
 0x341   :  { %v1333_v62 = vpop.eup %931  ;;  %v496_v63 = vpop.xlane.xlu1 %495 }
 0x342   :  { %v531_v1 = vmul.f32 1.442695, %v511_v61  ;;  %v517_v2 = vsub.f32 %v1271_v21, %v496_v63  ;;  %559 = vadd.xlane.f32.xlu0 %v1333_v62  ;;  %941 = vpow2.f32 %v533_v60 }
 0x343   :  { %v490_v3 = vpop.xlane.xlu0 %489 }
 0x344   :  { %943 = vpow2.f32 %v531_v1  ;;  %v543_v4 = vmul.f32 1.442695, %v517_v2  ;;  %v514_v5 = vsub.f32 %v1277_v24, %v490_v3 }
 0x345   :  { %v934_v6 = vpop.eup %933  ;;  %v492_v7 = vpop.xlane.xlu1 %491 }
 0x346   :  { %v537_v8 = vmul.f32 1.442695, %v514_v5  ;;  %v515_v9 = vsub.f32 %v1283_v28, %v492_v7  ;;  %555 = vadd.xlane.f32.xlu0 %v934_v6  ;;  %945 = vpow2.f32 %v543_v4  ;;  %v1339_v11 = vpop.eup %935 }
 0x347   :  { %v498_v10 = vpop.xlane.xlu0 %497  ;;  %v588_v47 = vpack.c.bf16 %v1339_v11, %v1333_v62 }
 0x348   :  { %947 = vpow2.f32 %v537_v8  ;;  %v539_v12 = vmul.f32 1.442695, %v515_v9  ;;  %v518_v13 = vsub.f32 %v1289_v31, %v498_v10 }
 0x349   :  { %v938_v14 = vpop.eup %937  ;;  %v504_v15 = vpop.xlane.xlu1 %503 }
 0x34a   :  { %561 = vadd.xlane.f32.xlu0 %v1339_v11  ;;  %557 = vadd.xlane.f32.xlu1 %v938_v14  ;;  %v587_v16 = vpack.c.bf16 %v938_v14, %v934_v6  ;;  %949 = vpow2.f32 %v539_v12  ;;  %v545_v18 = vmul.f32 1.442695, %v518_v13  ;;  %v521_v22 = vsub.f32 %v1295_v34, %v504_v15 }
 0x34b   :  { %v494_v17 = vpop.xlane.xlu0 %493 }
 0x34c   :  { %v516_v19 = vsub.f32 %v1301_v37, %v494_v17  ;;  %876 = vmatprep.mubr.bf16.mxu0 %v587_v16  ;;  %951 = vpow2.f32 %v545_v18  ;;  %v551_v30 = vmul.f32 1.442695, %v521_v22 }
 0x34d   :  { %v940_v20 = vpop.eup %939  ;;  %v500_v21 = vpop.xlane.xlu1 %499 }
 0x34e   :  { %v519_v23 = vsub.f32 %v1307_v40, %v500_v21  ;;  %567 = vadd.xlane.f32.xlu1 %v940_v20  ;;  %v541_v26 = vmul.f32 1.442695, %v516_v19 }
 0x34f   :  { %v506_v24 = vpop.xlane.xlu0 %505  ;;  %v942_v25 = vpop.eup %941 }
 0x350   :  { %v547_v28 = vmul.f32 1.442695, %v519_v23  ;;  %v522_v35 = vsub.f32 %v1310_v41, %v506_v24 }
 0x351   :  { %v944_v29 = vpop.eup %943  ;;  %v598_v39 = vpop.permute.xlu1 %597 }
 0x352   :  { %953 = vpow2.f32 %v547_v28  ;;  %563 = vadd.xlane.f32.xlu1 %v944_v29  ;;  %v589_v31 = vpack.c.bf16 %v942_v25, %v944_v29  ;;  %v553_v42 = vmul.f32 1.442695, %v522_v35 }
 0x353   :  { %v502_v32 = vpop.xlane.xlu0 %501  ;;  %v946_v33 = vpop.eup %945  ;;  %955 = vpow2.f32 %v541_v26 }
 0x354   :  { %v520_v34 = vsub.f32 %v1317_v44, %v502_v32  ;;  %880 = vmatprep.mubr.bf16.mxu1 %v589_v31  ;;  %957 = vpow2.f32 %v551_v30 }
 0x355   :  { %v948_v37 = vpop.eup %947  ;;  %v596_v44 = vpop.permute.xlu1 %595 }
 0x356   :  { %v549_v38 = vmul.f32 1.442695, %v520_v34  ;;  %575 = vadd.xlane.f32.xlu1 %v946_v33  ;;  %569 = vadd.xlane.f32.xlu0 %v948_v37  ;;  %v590_v49 = vpack.c.bf16 %v948_v37, %v940_v20 }
 0x357   :  { %v600_v40 = vpop.permute.xlu0 %599  ;;  %v950_v43 = vpop.eup %949 }
 0x358   :  { %959 = vpow2.f32 %v549_v38  ;;  %870 = vmatprep.subr.bf16.mxu0 %v600_v40  ;;  %897 = vmatprep.subr.bf16.mxu1 %v600_v40 }
 0x359   :  { %871 = vmatpush3.bf16.msra.mxu0 %v600_v40  ;;  %905 = vmatpush3.bf16.msra.mxu1 %v600_v40  ;;  %961 = vpow2.f32 %v553_v42  ;;  %v952_v41 = vpop.eup %951 }
 0x35a   :  { %571 = vadd.xlane.f32.xlu1 %v950_v43  ;;  %565 = vadd.xlane.f32.xlu0 %v942_v25  ;;  %v592_v53 = vpack.c.bf16 %v952_v41, %v946_v33 }
 0x35b   :  { %872 = vmatprep.subr.bf16.mxu0 %v598_v39  ;;  %898 = vmatprep.subr.bf16.mxu1 %v598_v39 }
 0x35d   :  { %873 = vmatpush3.bf16.msra.mxu0 %v598_v39  ;;  %906 = vmatpush3.bf16.msra.mxu1 %v598_v39 }
 0x35e   :  { %577 = vadd.xlane.f32.xlu0 %v952_v41  ;;  %874 = vmatprep.subr.bf16.mxu0 %v596_v44 }
 0x35f   :  { %v954_v45 = vpop.eup %953  ;;  %899 = vmatprep.subr.bf16.mxu1 %v596_v44 }
 0x360   :  { %579 = vadd.xlane.f32.xlu1 %v954_v45  ;;  %v956_v46 = vpop.eup %955 }
 0x361   :  { %875 = vmatpush3.bf16.msra.mxu0 %v596_v44  ;;  %907 = vmatpush3.bf16.msra.mxu1 %v596_v44  ;;  %v958_v48 = vpop.eup %957  ;;  %v591_v50 = vpack.c.bf16 %v956_v46, %v950_v43 }
 0x362   :  { %573 = vadd.xlane.f32.xlu0 %v956_v46 }
 0x364   :  { %583 = vadd.xlane.f32.xlu1 %v958_v48  ;;  %877 = vmatmul.mubr.bf16.vlgmr.msra.gmra.mxu0 %v588_v47 }
 0x365   :  { %v960_v51 = vpop.eup %959  ;;  %881 = vmatmul.mubr.bf16.vlgmr.msra.gmra.mxu1 %v590_v49 }
 0x366   :  { %884 = vmatprep.mubr.bf16.mxu1 %v591_v50  ;;  %581 = vadd.xlane.f32.xlu0 %v960_v51  ;;  %v962_v52 = vpop.eup %961  ;;  %v593_v36 = vpack.c.bf16 %v960_v51, %v954_v45 }
 0x367   :  { %v594_v0 = vpack.c.bf16 %v962_v52, %v958_v48 }
 0x36a   :  { %585 = vadd.xlane.f32.xlu0 %v962_v52 }
 0x36d   :  { %885 = vmatmul.mubr.bf16.gmra.mxu1 %v592_v53 }
 0x36e   :  { %888 = vmatprep.mubr.bf16.mxu1 %v593_v36 }
 0x375   :  { %889 = vmatmul.mubr.bf16.gmra.mxu1 %v594_v0 }
 0x3cb   :  { %v560_v54 = vpop.xlane.xlu0 %559 }
 0x3cc   :  { %963 = vrcp.f32 %v560_v54 }
 0x3cf   :  { %v556_v27 = vpop.xlane.xlu0 %555 }
 0x3d3   :  { %v558_v55 = vpop.xlane.xlu1 %557  ;;  %v562_v56 = vpop.xlane.xlu0 %561 }
 0x3d7   :  { %v568_v57 = vpop.xlane.xlu1 %567 }
 0x3d8   :  { %965 = vrcp.f32 %v568_v57 }
 0x3d9   :  { %967 = vrcp.f32 %v556_v27  ;;  %v964_v4 = vpop.eup %963 }
 0x3db   :  { %v564_v59 = vpop.xlane.xlu1 %563 }
 0x3dc   :  { %969 = vrcp.f32 %v564_v59 }
 0x3dd   :  { %971 = vrcp.f32 %v562_v56 }
 0x3df   :  { %v570_v58 = vpop.xlane.xlu0 %569  ;;  %v576_v61 = vpop.xlane.xlu1 %575 }
 0x3e0   :  { %973 = vrcp.f32 %v570_v58 }
 0x3e1   :  { %975 = vrcp.f32 %v558_v55 }
 0x3e3   :  { %v566_v60 = vpop.xlane.xlu0 %565  ;;  %v572_v63 = vpop.xlane.xlu1 %571 }
 0x3e4   :  { %977 = vrcp.f32 %v566_v60 }
 0x3e5   :  { %979 = vrcp.f32 %v576_v61  ;;  %v966_v6 = vpop.eup %965 }
 0x3e6   :  { %981 = vrcp.f32 %v572_v63  ;;  %v968_v10 = vpop.eup %967 }
 0x3e7   :  { %v578_v62 = vpop.xlane.xlu0 %577 }
 0x3e8   :  { %983 = vrcp.f32 %v578_v62 }
 0x3e9   :  { %v580_v2 = vpop.xlane.xlu1 %579  ;;  %v970_v13 = vpop.eup %969 }
 0x3ea   :  { %v972_v16 = vpop.eup %971 }
 0x3eb   :  { %v574_v1 = vpop.xlane.xlu0 %573 }
 0x3ec   :  { %985 = vrcp.f32 %v574_v1 }
 0x3ed   :  { %v584_v7 = vpop.xlane.xlu1 %583  ;;  %v974_v19 = vpop.eup %973 }
 0x3ee   :  { %987 = vrcp.f32 %v584_v7  ;;  %v976_v23 = vpop.eup %975 }
 0x3ef   :  { %v582_v3 = vpop.xlane.xlu0 %581  ;;  %989 = vrcp.f32 %v580_v2 }
 0x3f1   :  { %v978_v26 = vpop.eup %977 }
 0x3f2   :  { %v980_v31 = vpop.eup %979 }
 0x3f3   :  { %v586_v20 = vpop.xlane.xlu0 %585  ;;  %v982_v35 = vpop.eup %981 }
 0x3f4   :  { %991 = vrcp.f32 %v586_v20 }
 0x3f5   :  { %993 = vrcp.f32 %v582_v3  ;;  %v984_v38 = vpop.eup %983 }
 0x3f9   :  { %v986_v42 = vpop.eup %985 }
 0x3fb   :  { %v988_v44 = vpop.eup %987 }
 0x3fc   :  { %v990_v47 = vpop.eup %989 }
 0x401   :  { %v992_v50 = vpop.eup %991 }
 0x402   :  { %v994_v53 = vpop.eup %993 }
 0x424   :  { %v878_v5 = vpop.f32.mrf.mxu0 }
 0x425   :  { %v734_v8 = vmul.f32 %v964_v4, %v878_v5  ;;  %v882_v9 = vpop.f32.mrf.mxu1 }
 0x426   :  { %v738_v11 = vmul.f32 %v966_v6, %v882_v9  ;;  %v653_v12 = vpop.f32.mrf.mxu0 }
 0x427   :  { %750 = vst.msk [vmem:[%s1417_s3 + $0x10] sm:$0xff] %vm329_vm1, %v734_v8  ;;  %v732_v14 = vmul.f32 %v968_v10, %v653_v12  ;;  %v669_v15 = vpop.f32.mrf.mxu1 }
 0x428   :  { %754 = vst.msk [vmem:[%s1417_s3 + $0x30] sm:$0xff] %vm329_vm1, %v738_v11  ;;  %v736_v17 = vmul.f32 %v970_v13, %v669_v15  ;;  %v879_v18 = vpop.f32.mrf.mxu0 }
 0x429   :  { %748 = vst.msk [vmem:[%s1417_s3] sm:$0xff] %vm329_vm1, %v732_v14  ;;  %v735_v21 = vmul.f32 %v972_v16, %v879_v18  ;;  %v883_v22 = vpop.f32.mrf.mxu1 }
 0x42a   :  { %752 = vst.msk [vmem:[%s1417_s3 + $0x20] sm:$0xff] %vm329_vm1, %v736_v17  ;;  %v739_v24 = vmul.f32 %v974_v19, %v883_v22  ;;  %v656_v25 = vpop.f32.mrf.mxu0 }
 0x42b   :  { %751 = vst.msk [vmem:[%s1417_s3 + $0x18] sm:$0xff] %vm329_vm1, %v735_v21  ;;  %v733_v28 = vmul.f32 %v976_v23, %v656_v25  ;;  %v672_v29 = vpop.f32.mrf.mxu1 }
 0x42c   :  { %755 = vst.msk [vmem:[%s1417_s3 + $0x38] sm:$0xff] %vm329_vm1, %v739_v24  ;;  %v737_v30 = vmul.f32 %v978_v26, %v672_v29 }
 0x42d   :  { %749 = vst.msk [vmem:[%s1417_s3 + $0x8] sm:$0xff] %vm329_vm1, %v733_v28  ;;  %v886_v32 = vpop.f32.mrf.mxu1 }
 0x42e   :  { %753 = vst.msk [vmem:[%s1417_s3 + $0x28] sm:$0xff] %vm329_vm1, %v737_v30  ;;  %v742_v33 = vmul.f32 %v980_v31, %v886_v32 }
 0x42f   :  { %v685_v34 = vpop.f32.mrf.mxu1 }
 0x430   :  { %758 = vst.msk [vmem:[%s1417_s3 + $0x50] sm:$0xff] %vm329_vm1, %v742_v33  ;;  %v740_v37 = vmul.f32 %v982_v35, %v685_v34 }
 0x431   :  { %v887_v39 = vpop.f32.mrf.mxu1 }
 0x432   :  { %756 = vst.msk [vmem:[%s1417_s3 + $0x40] sm:$0xff] %vm329_vm1, %v740_v37  ;;  %v743_v40 = vmul.f32 %v984_v38, %v887_v39 }
 0x433   :  { %v688_v43 = vpop.f32.mrf.mxu1 }
 0x434   :  { %759 = vst.msk [vmem:[%s1417_s3 + $0x58] sm:$0xff] %vm329_vm1, %v743_v40  ;;  %v741_v41 = vmul.f32 %v986_v42, %v688_v43 }
 0x435   :  { %v890_v45 = vpop.f32.mrf.mxu1 }
 0x436   :  { %757 = vst.msk [vmem:[%s1417_s3 + $0x48] sm:$0xff] %vm329_vm1, %v741_v41  ;;  %v746_v46 = vmul.f32 %v988_v44, %v890_v45 }
 0x437   :  { %v701_v48 = vpop.f32.mrf.mxu1 }
 0x438   :  { %762 = vst.msk [vmem:[%s1417_s3 + $0x70] sm:$0xff] %vm329_vm1, %v746_v46  ;;  %v744_v49 = vmul.f32 %v990_v47, %v701_v48 }
 0x439   :  { %v891_v51 = vpop.f32.mrf.mxu1 }
 0x43a   :  { %760 = vst.msk [vmem:[%s1417_s3 + $0x60] sm:$0xff] %vm329_vm1, %v744_v49  ;;  %v747_v52 = vmul.f32 %v992_v50, %v891_v51 }
 0x43b   :  { %v704_v36 = vpop.f32.mrf.mxu1 }
 0x43c   :  { %763 = vst.msk [vmem:[%s1417_s3 + $0x78] sm:$0xff] %vm329_vm1, %v747_v52  ;;  %v745_v0 = vmul.f32 %v994_v53, %v704_v36 }
 0x43e   :  { %761 = vst.msk [vmem:[%s1417_s3 + $0x68] sm:$0xff] %vm329_vm1, %v745_v0 }

</bundles_post_ra>
